<compile_context>
chip_gen: v7x
topology: tpu7x:2x2x1
jax: 0.10.0
libtpu: 0.0.40
codegen_flags: <defaults>
</compile_context>

<pallas_src>
import jax
import jax.numpy as jnp
from jax.experimental import pallas as pl
from jax.experimental.pallas import tpu as pltpu

_LANES = 128
_SQRT_2_OVER_PI = 0.7978845608028654  # sqrt(2/pi)


def _gelu_kernel(x_ref, o_ref):
    # Compute in f32 regardless of input dtype; cast only on the final store.
    x = x_ref[...].astype(jnp.float32)
    inner = _SQRT_2_OVER_PI * (x + 0.044715 * x * x * x)
    y = 0.5 * x * (1.0 + jnp.tanh(inner))
    o_ref[...] = y.astype(o_ref.dtype)


def _sublane_multiple(dtype) -> int:
    itemsize = jnp.dtype(dtype).itemsize
    if itemsize >= 4:
        return 8
    if itemsize == 2:
        return 16
    return 32


def _round_up(x: int, m: int) -> int:
    return ((x + m - 1) // m) * m


def gelu_pallas(x: jax.Array, row_tile: int = 8192) -> jax.Array:
    """Elementwise tanh-GELU. Accepts any shape/float dtype, returns same shape."""
    orig_shape = x.shape
    dtype = x.dtype
    itemsize = jnp.dtype(dtype).itemsize

    flat = x.reshape(-1)  # reshape of contiguous array is free
    n = flat.shape[0]

    # Pad only when the element count is not lane-aligned (rare for NCHW
    # activations); a single jnp.pad, and a single slice on the way out.
    padded_n = _round_up(n, _LANES)
    needs_pad = padded_n != n
    if needs_pad:
        flat = jnp.pad(flat, (0, padded_n - n))
    rows = padded_n // _LANES
    x2d = flat.reshape(rows, _LANES)

    # Tile rows: dtype-aware sublane alignment, large by default, never
    # bigger than the (sublane-rounded) row count. Ragged last block is
    # handled by the cdiv grid — no divisibility shrink-loop.
    sub = _sublane_multiple(dtype)
    tile_rows = max(sub, (min(row_tile, _round_up(rows, sub)) // sub) * sub)
    assert tile_rows % sub == 0

    grid = (pl.cdiv(rows, tile_rows),)

    # Double-buffered input + output => ~4 live tile buffers. Give headroom,
    # make sure we are above v5e's 16 MiB default scoped limit, stay well
    # under v7x's 64 MiB physical VMEM per TensorCore.
    tile_bytes = tile_rows * _LANES * itemsize
    vmem_need = 4 * tile_bytes + (8 << 20)
    vmem_limit = min(max(vmem_need, 32 << 20), 56 << 20)

    cost = pl.CostEstimate(
        flops=10 * padded_n,
        transcendentals=padded_n,
        bytes_accessed=2 * padded_n * itemsize,
    )

    out2d = pl.pallas_call(
        _gelu_kernel,
        out_shape=jax.ShapeDtypeStruct((rows, _LANES), dtype),
        grid=grid,
        in_specs=[pl.BlockSpec((tile_rows, _LANES), lambda i: (i, 0))],
        out_specs=pl.BlockSpec((tile_rows, _LANES), lambda i: (i, 0)),
        compiler_params=pltpu.CompilerParams(
            dimension_semantics=("parallel",),
            vmem_limit_bytes=vmem_limit,
        ),
        cost_estimate=cost,
    )(x2d)

    out_flat = out2d.reshape(-1)
    if needs_pad:
        out_flat = out_flat[:n]
    return out_flat.reshape(orig_shape)


def gelu_reference(x: jnp.ndarray) -> jnp.ndarray:
    c = jnp.sqrt(2.0 / jnp.pi)
    return 0.5 * x * (1.0 + jnp.tanh(c * (x + 0.044715 * jnp.power(x, 3))))


if __name__ == "__main__":
    key = jax.random.PRNGKey(0)
    # NCHW input, matching the conv-net context of the original module.
    x = jax.random.normal(key, (2, 4, 16, 16), dtype=jnp.float32)

    y = gelu_pallas(x)
    y = jax.block_until_ready(y)

    y_ref = gelu_reference(x)
    assert y.shape == x.shape and y.dtype == x.dtype
    assert jnp.allclose(y, y_ref, atol=1e-5, rtol=1e-5), "mismatch vs reference GELU"

    # Also sanity-check a lane-unaligned odd size and a bf16 input path.
    x_odd = jax.random.normal(key, (3, 5, 7, 11), dtype=jnp.float32)
    y_odd = jax.block_until_ready(gelu_pallas(x_odd))
    assert jnp.allclose(y_odd, gelu_reference(x_odd), atol=1e-5, rtol=1e-5)

    x_bf16 = x.astype(jnp.bfloat16)
    y_bf16 = jax.block_until_ready(gelu_pallas(x_bf16))
    assert y_bf16.dtype == jnp.bfloat16
    assert jnp.allclose(
        y_bf16.astype(jnp.float32), gelu_reference(x), atol=2e-2, rtol=2e-2
    )

    print("KERNEL_OK")
</pallas_src>

<mosaic_0001>
module attributes {stable_mosaic.version = 11 : i64} {
  func.func @_gelu_kernel(%arg0: i32, %arg1: memref<16x128xf32, #tpu.memory_space<vmem>>, %arg2: memref<16x128xf32, #tpu.memory_space<vmem>>) attributes {dimension_semantics = [#tpu.dimension_semantics<parallel>], iteration_bounds = array<i64: 1>, scalar_prefetch = 0 : i64, scratch_operands = 0 : i64, tpu.core_type = #tpu.core_type<tc>, window_params = [{transform_indices = @transform_0, window_bounds = array<i64: 16, 128>}, {transform_indices = @transform_1, window_bounds = array<i64: 16, 128>}]} {
    %c0 = arith.constant 0 : index
    %c0_0 = arith.constant 0 : index
    %0 = vector.load %arg1[%c0, %c0_0] : memref<16x128xf32, #tpu.memory_space<vmem>>, vector<16x128xf32>
    %cst = arith.constant 4.471500e-02 : f32
    %1 = vector.broadcast %cst : f32 to vector<16x128xf32>
    %2 = arith.mulf %1, %0 : vector<16x128xf32>
    %3 = arith.mulf %2, %0 : vector<16x128xf32>
    %4 = arith.mulf %3, %0 : vector<16x128xf32>
    %5 = arith.addf %0, %4 : vector<16x128xf32>
    %cst_1 = arith.constant 0.797884583 : f32
    %6 = vector.broadcast %cst_1 : f32 to vector<16x128xf32>
    %7 = arith.mulf %6, %5 : vector<16x128xf32>
    %cst_2 = arith.constant 5.000000e-01 : f32
    %8 = vector.broadcast %cst_2 : f32 to vector<16x128xf32>
    %9 = arith.mulf %8, %0 : vector<16x128xf32>
    %10 = math.tanh %7 : vector<16x128xf32>
    %cst_3 = arith.constant 1.000000e+00 : f32
    %11 = vector.broadcast %cst_3 : f32 to vector<16x128xf32>
    %12 = arith.addf %11, %10 : vector<16x128xf32>
    %13 = arith.mulf %9, %12 : vector<16x128xf32>
    %c0_4 = arith.constant 0 : index
    %c0_5 = arith.constant 0 : index
    %14 = vector.load %arg2[%c0_4, %c0_5] : memref<16x128xf32, #tpu.memory_space<vmem>>, vector<16x128xf32>
    tpu.vector_store %arg2[%c0_4, %c0_5], %13 {strides = array<i32>} : memref<16x128xf32, #tpu.memory_space<vmem>>, vector<16x128xf32>,
    return
  }
  func.func @transform_0(%arg0: i32) -> (i32, i32) {
    %c0_i32 = arith.constant 0 : i32
    %c0_i32_0 = arith.constant 0 : i32
    return %arg0, %c0_i32 : i32, i32
  }
  func.func @transform_1(%arg0: i32) -> (i32, i32) {
    %c0_i32 = arith.constant 0 : i32
    %c0_i32_0 = arith.constant 0 : i32
    return %arg0, %c0_i32 : i32, i32
  }
}

</mosaic_0001>

<bundles_post_ra>
// kernel: tpu_custom_call.1
= control target key start
LH: loop header
LB: loop body
LE: loop exit
PB: predicated region body
PF: predicated region fallthrough
CT: control target
= control target key end

     0   :  { %6 = vsyncpa [#allocation3], 0  ;;  %s162_s0 = inlined_call_operand.hbm [shape: f32[16,128], index: 0, kind: input, shape index: {}]   ;;  %s163_s1 = inlined_call_operand.hbm [shape: f32[16,128], index: 1, kind: output, shape index: {}]  }
   0x1   :  { %7 = vsyncpa [#allocation4], 0  ;;  %s118_s6 = smov [#allocation2]   ;;  %s70_s10 = scalar_lea.hbm %s162_s0, 256 }
   0x2   :  { %s13_s7 = sshll.u32 %s118_s6, 4  ;;  %p71_p0 = scmp.ne.s32.totalorder %s162_s0, %s70_s10  ;;  %s14_s7 = int_to_ptr.vmem [resolvable:$true] %s13_s7 }
   0x3   :  { %p74_p1 = scmp.lt.u32.totalorder %s70_s10, %s162_s0 }
   0x5   :  { %p76_p2 = pnand %p74_p1, %p71_p0 }
   0x7   :  { %79 = shalt.err (!%p76_p2)
}
   0x8   :  { %s80_s15 = scalar_lea.vmem %s14_s7, 256  ;;  %p85_p4 = scmp.lt.s32.totalorder %s14_s7, %s14_s7 }
   0x9   :  { %p81_p3 = scmp.ne.s32.totalorder %s14_s7, %s80_s15  ;;  %p86_p5 = scmp.lt.s32.totalorder %s80_s15, %s80_s15 }
   0xb   :  { %p87_p6 = por %p86_p5, %p85_p4 }
   0xd   :  { %p88_p7 = pnand %p87_p6, %p81_p3 }
   0xf   :  { %91 = shalt.err (!%p88_p7)
}
  0x10   :  { %s119_s16 = smov 128   ;;  %s120_s17 = smov 8  }
  0x11   :  { %19 = dma.hbm_to_vmem [thread:$0]  %s162_s0, 256, %s14_s7, [#allocation3], %s119_s16, %s119_s16, %s120_s17  }
  0x12   :  { %114 = dma.done.wait [#allocation3], 256  }
  0x13   :  { %115 = vsyncadd [#allocation3], 4294967040  ;;  %v23_v0 = vld [vmem:[#allocation2] sm:$0xff]  ;;  %v24_v1 = vld [vmem:[#allocation2 + $0x8] sm:$0xff]  ;;  %s121_s0 = smov [#allocation5]  }
  0x14   :  { %v25_v2 = vmul.f32 0.044715, %v23_v0  ;;  %v26_v3 = vmul.f32 0.044715, %v24_v1  ;;  %v35_v12 = vmul.f32 0.5, %v23_v0  ;;  %v36_v14 = vmul.f32 0.5, %v24_v1 }
  0x15   :  { %s50_s20 = sshll.u32 %s121_s0, 4  ;;  %s51_s20 = int_to_ptr.vmem [resolvable:$true] %s50_s20 }
  0x16   :  { %v27_v4 = vmul.f32 %v25_v2, %v23_v0  ;;  %v28_v5 = vmul.f32 %v26_v3, %v24_v1  ;;  %s92_s21 = scalar_lea.vmem %s51_s20, 256  ;;  %p97_p9 = scmp.lt.s32.totalorder %s51_s20, %s51_s20 }
  0x17   :  { %p93_p8 = scmp.ne.s32.totalorder %s51_s20, %s92_s21  ;;  %p98_p10 = scmp.lt.s32.totalorder %s92_s21, %s92_s21 }
  0x18   :  { %v29_v6 = vmul.f32 %v27_v4, %v23_v0  ;;  %v30_v7 = vmul.f32 %v28_v5, %v24_v1 }
  0x19   :  { %p99_p11 = por %p98_p10, %p97_p9 }
  0x1a   :  { %v31_v8 = vadd.f32 %v29_v6, %v23_v0  ;;  %v32_v9 = vadd.f32 %v30_v7, %v24_v1 }
  0x1b   :  { %p100_p12 = pnand %p99_p11, %p93_p8 }
  0x1c   :  { %v33_v10 = vmul.f32 0.7978846, %v31_v8  ;;  %v34_v11 = vmul.f32 0.7978846, %v32_v9 }
  0x1e   :  { %66 = vtanh.f32 %v33_v10 }
  0x1f   :  { %68 = vtanh.f32 %v34_v11 }
  0x28   :  { %v67_v13 = vpop.eup %66 }
  0x29   :  { %v69_v15 = vpop.eup %68  ;;  %v39_v16 = vadd.f32 1.0, %v67_v13 }
  0x2a   :  { %v40_v17 = vadd.f32 1.0, %v69_v15 }
  0x2b   :  { %v41_v18 = vmul.f32 %v39_v16, %v35_v12 }
  0x2c   :  { %v42_v19 = vmul.f32 %v40_v17, %v36_v14 }
  0x2d   :  { %43 = vst [vmem:[#allocation5] sm:$0xff] %v41_v18 }
  0x2e   :  { %44 = vst [vmem:[#allocation5 + $0x8] sm:$0xff] %v42_v19 }
  0x2f   :  { %103 = shalt.err (!%p100_p12)
}
  0x30   :  { %s104_s24 = scalar_lea.hbm %s163_s1, 256 }
  0x31   :  { %p105_p13 = scmp.ne.s32.totalorder %s163_s1, %s104_s24  ;;  %p108_p0 = scmp.lt.u32.totalorder %s104_s24, %s163_s1 }
  0x33   :  { %p110_p1 = pnand %p108_p0, %p105_p13 }
  0x35   :  { %113 = shalt.err (!%p110_p1)
}
  0x36   :  { %56 = dma.vmem_to_hbm [thread:$0]  %s51_s20, 256, %s163_s1, [#allocation4], %s119_s16, %s119_s16, %s120_s17  }
  0x37   :  { %116 = dma.done.wait [#allocation4], 256  }
  0x38   :  { %117 = vsyncadd [#allocation4], 4294967040 }
  0x39   :  { %60 = vsyncpa [#allocation3], 1 }
  0x3a   :  { %61 = vsyncpa [#allocation4], 1 }

</bundles_post_ra>
